<compile_context>
chip_gen: v6e
topology: v6e:2x2x1
jax: 0.10.0
libtpu: 0.0.40
codegen_flags: <defaults>
</compile_context>

<pallas_src>
import functools

import jax
import jax.numpy as jnp
from jax.experimental import pallas as pl
from jax.experimental.pallas import tpu as pltpu


NEG_SLOPE = 0.01  # PyTorch nn.LeakyReLU default


def _round_up(n, m):
    return ((n + m - 1) // m) * m


def _default_compute_dtype():
    """bf16 elementwise on chips with a bf16 VPU (v6e/v7x); f32 otherwise."""
    try:
        kind = jax.devices()[0].device_kind.lower()
    except Exception:
        return jnp.float32
    if "v6" in kind or "v7" in kind or "7x" in kind:
        return jnp.bfloat16
    return jnp.float32


def _fused_kernel(x_ref, wc_ref, bc_ref, w1_ref, b1_ref, w2_ref, b2_ref,
                  w3_ref, b3_ref, o_ref, *, compute_dtype):
    # x tile: (tb, 49) f32 -> bf16 cast happens here, hidden under the DMA,
    # instead of as a separate HBM pass in the wrapper.
    x_bf = x_ref[...].astype(jnp.bfloat16)

    # Conv-as-matmul with batch on lanes:
    #   h1^T[s, b] = sum_k Wc[s, k] * x[b, k]   -> (sz, tb)
    # Contraction over dim 1 of both operands ("A @ B^T"), folded into the
    # MXU matmul (same pattern as q @ k^T in flash attention).
    h = jax.lax.dot_general(
        wc_ref[...], x_bf,
        dimension_numbers=(((1,), (1,)), ((), ())),
        preferred_element_type=compute_dtype)
    h = h + bc_ref[...].astype(compute_dtype)        # (sz,1) lane-broadcast
    h = jnp.maximum(h, NEG_SLOPE * h)                 # LeakyReLU

    # Linear(sz, sz) + LeakyReLU, twice.  Dropout(dp=0) is the identity.
    # PyTorch layout W (out, in) is already the transposed-pipeline layout:
    #   h_next^T = W @ h^T.
    for w_ref, b_ref in ((w1_ref, b1_ref), (w2_ref, b2_ref)):
        h = jnp.dot(w_ref[...], h.astype(jnp.bfloat16),
                    preferred_element_type=compute_dtype)
        h = h + b_ref[...].astype(compute_dtype)
        h = jnp.maximum(h, NEG_SLOPE * h)

    # Linear(sz, 1) in f32 on the VPU/XLU (no wasteful M=1 MXU matmul):
    #   z[0, b] = sum_s w3[s, 0] * h[s, b] + b3
    h32 = h.astype(jnp.float32)
    z = jnp.sum(h32 * w3_ref[...], axis=0, keepdims=True) + b3_ref[...]

    # Exact sigmoid (EUP exp is a free slot; the kernel is HBM/DMA bound).
    o_ref[...] = 1.0 / (1.0 + jnp.exp(-z))            # (1, tb) lane-dense


def seven_by_seven_forward(x_nchw, params, *, tile_b=8192, compute_dtype=None):
    """x_nchw: (B, 1, 7, 7) float32. Returns (B, 1) float32."""
    B = x_nchw.shape[0]
    assert x_nchw.shape[1:] == (1, 7, 7), "module requires a 1x7x7 input"
    assert tile_b >= 128 and tile_b % 128 == 0, "tile_b must be a multiple of 128"
    # NOTE: tile_b > ~16384 needs a larger vmem_limit_bytes below.

    conv_w, conv_b, lin1_w, lin1_b, lin2_w, lin2_b, lin3_w, lin3_b = params
    sz = conv_w.shape[0]

    if compute_dtype is None:
        compute_dtype = _default_compute_dtype()

    # Free reshape (contiguous): the conv consumes the full 7x7 window, so it
    # is a matmul over the 49 flattened pixels.  x stays f32 here.
    x_flat = x_nchw.reshape(B, 49)

    # Tiny, VMEM-resident weights: cast/reshape once per call.
    wc = conv_w.reshape(sz, 49).astype(jnp.bfloat16)   # (sz, 49)
    bc = conv_b.reshape(sz, 1)                         # (sz, 1)  f32
    w1 = lin1_w.astype(jnp.bfloat16)                   # (sz, sz) PyTorch layout
    b1 = lin1_b.reshape(sz, 1)
    w2 = lin2_w.astype(jnp.bfloat16)
    b2 = lin2_b.reshape(sz, 1)
    w3 = lin3_w.reshape(sz, 1)                         # (sz, 1)  f32 column
    b3 = lin3_b.reshape(1, 1)

    # Batch tile: as big as requested (amortizes per-step pipeline overhead),
    # never bigger than needed, and always a multiple of 128 so the lane-dense
    # (1, tb) output block is legal.  If the whole batch fits one tile but is
    # large, split it in two so both v7x TensorCores get work.
    tb = min(tile_b, _round_up(B, 128))
    if B > 2048 and B <= tb:
        tb = _round_up(pl.cdiv(B, 2), 128)
    grid = (pl.cdiv(B, tb),)   # ragged last tile handled by Pallas masking

    resident = lambda i: (0, 0)   # weights/biases: same block every grid step

    out = pl.pallas_call(
        functools.partial(_fused_kernel, compute_dtype=compute_dtype),
        out_shape=jax.ShapeDtypeStruct((1, B), jnp.float32),
        grid=grid,
        in_specs=[
            pl.BlockSpec((tb, 49), lambda i: (i, 0)),   # x tile (f32, pipelined)
            pl.BlockSpec((sz, 49), resident),            # conv weight  (bf16)
            pl.BlockSpec((sz, 1), resident),             # conv bias    (f32)
            pl.BlockSpec((sz, sz), resident),            # linear-1 W   (bf16)
            pl.BlockSpec((sz, 1), resident),             # linear-1 b   (f32)
            pl.BlockSpec((sz, sz), resident),            # linear-2 W   (bf16)
            pl.BlockSpec((sz, 1), resident),             # linear-2 b   (f32)
            pl.BlockSpec((sz, 1), resident),             # linear-3 w col (f32)
            pl.BlockSpec((1, 1), resident),              # linear-3 b   (f32)
        ],
        out_specs=pl.BlockSpec((1, tb), lambda i: (0, i)),   # lane-dense output
        compiler_params=pltpu.CompilerParams(
            dimension_semantics=("parallel",),
            vmem_limit_bytes=32 * 1024 * 1024),
        # TODO(synk): verify on v7x (xprof) that "parallel" actually shards the
        # batch grid across both TensorCores; fall back to core_map if not.
    )(x_flat, wc, bc, w1, b1, w2, b2, w3, b3)

    # (1, B) and (B, 1) share the same linear layout -> free reshape.
    return out.reshape(B, 1)


def init_params(key, sz):
    """Deterministic synthetic parameters with PyTorch-module shapes (f32)."""
    ks = jax.random.split(key, 8)
    scale = 0.1
    conv_w = scale * jax.random.normal(ks[0], (sz, 1, 7, 7), jnp.float32)
    conv_b = scale * jax.random.normal(ks[1], (sz,), jnp.float32)
    lin1_w = scale * jax.random.normal(ks[2], (sz, sz), jnp.float32)
    lin1_b = scale * jax.random.normal(ks[3], (sz,), jnp.float32)
    lin2_w = scale * jax.random.normal(ks[4], (sz, sz), jnp.float32)
    lin2_b = scale * jax.random.normal(ks[5], (sz,), jnp.float32)
    lin3_w = scale * jax.random.normal(ks[6], (1, sz), jnp.float32)
    lin3_b = scale * jax.random.normal(ks[7], (1,), jnp.float32)
    return (conv_w, conv_b, lin1_w, lin1_b, lin2_w, lin2_b, lin3_w, lin3_b)


def _leaky(v):
    return jnp.where(v > 0, v, NEG_SLOPE * v)


def _reference_forward(x_nchw, params):
    """Plain-JAX f32 reference of the PyTorch forward (eval mode)."""
    conv_w, conv_b, lin1_w, lin1_b, lin2_w, lin2_b, lin3_w, lin3_b = params
    sz = conv_w.shape[0]
    x = x_nchw.reshape(x_nchw.shape[0], 49)
    h = _leaky(x @ conv_w.reshape(sz, 49).T + conv_b[None, :])
    h = _leaky(h @ lin1_w.T + lin1_b[None, :])
    h = _leaky(h @ lin2_w.T + lin2_b[None, :])
    z = h @ lin3_w.T + lin3_b[None, :]
    return jax.nn.sigmoid(z)


if __name__ == "__main__":
    key = jax.random.PRNGKey(0)
    k_p, k_x1, k_x2 = jax.random.split(key, 3)

    sz = 32
    params = init_params(k_p, sz)

    # Small batch: single grid step, ragged (2 valid rows of a 128-row tile).
    x_small = jax.random.normal(k_x1, (2, 1, 7, 7), jnp.float32)
    out_small = jax.block_until_ready(seven_by_seven_forward(x_small, params))
    ref_small = _reference_forward(x_small, params)
    assert out_small.shape == (2, 1)
    err_small = float(jnp.max(jnp.abs(out_small - ref_small)))
    assert err_small < 2e-2, "max abs err (small): %f" % err_small

    # Multi-step batch with a ragged last tile: exercises the grid, resident
    # weights, masked tail handling and the lane-dense output writeback.
    x_big = jax.random.normal(k_x2, (300, 1, 7, 7), jnp.float32)
    out_big = jax.block_until_ready(
        seven_by_seven_forward(x_big, params, tile_b=256))
    ref_big = _reference_forward(x_big, params)
    assert out_big.shape == (300, 1)
    err_big = float(jnp.max(jnp.abs(out_big - ref_big)))
    assert err_big < 2e-2, "max abs err (big): %f" % err_big

    print("KERNEL_OK")
</pallas_src>

<mosaic_0001>
module attributes {stable_mosaic.version = 11 : i64} {
  func.func @_fused_kernel(%arg0: i32, %arg1: memref<128x49xf32, #tpu.memory_space<vmem>>, %arg2: memref<32x49xbf16, #tpu.memory_space<vmem>>, %arg3: memref<32x1xf32, #tpu.memory_space<vmem>>, %arg4: memref<32x32xbf16, #tpu.memory_space<vmem>>, %arg5: memref<32x1xf32, #tpu.memory_space<vmem>>, %arg6: memref<32x32xbf16, #tpu.memory_space<vmem>>, %arg7: memref<32x1xf32, #tpu.memory_space<vmem>>, %arg8: memref<32x1xf32, #tpu.memory_space<vmem>>, %arg9: memref<1x1xf32, #tpu.memory_space<vmem>>, %arg10: memref<1x128xf32, #tpu.memory_space<vmem>>) attributes {dimension_semantics = [#tpu.dimension_semantics<parallel>], iteration_bounds = array<i64: 1>, scalar_prefetch = 0 : i64, scratch_operands = 0 : i64, tpu.core_type = #tpu.core_type<tc>, window_params = [{transform_indices = @transform_0, window_bounds = array<i64: 128, 49>}, {pipeline_mode = #tpu.pipeline_mode<synchronous>, transform_indices = @transform_1, window_bounds = array<i64: 32, 49>}, {pipeline_mode = #tpu.pipeline_mode<synchronous>, transform_indices = @transform_2, window_bounds = array<i64: 32, 1>}, {pipeline_mode = #tpu.pipeline_mode<synchronous>, transform_indices = @transform_3, window_bounds = array<i64: 32, 32>}, {pipeline_mode = #tpu.pipeline_mode<synchronous>, transform_indices = @transform_4, window_bounds = array<i64: 32, 1>}, {pipeline_mode = #tpu.pipeline_mode<synchronous>, transform_indices = @transform_5, window_bounds = array<i64: 32, 32>}, {pipeline_mode = #tpu.pipeline_mode<synchronous>, transform_indices = @transform_6, window_bounds = array<i64: 32, 1>}, {pipeline_mode = #tpu.pipeline_mode<synchronous>, transform_indices = @transform_7, window_bounds = array<i64: 32, 1>}, {pipeline_mode = #tpu.pipeline_mode<synchronous>, transform_indices = @transform_8, window_bounds = array<i64: 1, 1>}, {transform_indices = @transform_9, window_bounds = array<i64: 1, 128>}]} {
    %c0 = arith.constant 0 : index
    %c0_0 = arith.constant 0 : index
    %0 = vector.load %arg1[%c0, %c0_0] : memref<128x49xf32, #tpu.memory_space<vmem>>, vector<128x49xf32>
    %1 = arith.truncf %0 : vector<128x49xf32> to vector<128x49xbf16>
    %c0_1 = arith.constant 0 : index
    %c0_2 = arith.constant 0 : index
    %2 = vector.load %arg2[%c0_1, %c0_2] : memref<32x49xbf16, #tpu.memory_space<vmem>>, vector<32x49xbf16>
    %cst = arith.constant dense<0.000000e+00> : vector<32x128xf32>
    %3 = tpu.matmul %2, %1, %cst {dimension_numbers = #tpu.dot_dimension_numbers<[1], [1], [0], [0], [0, 0, 1, 0], [], []>} : vector<32x49xbf16>, vector<128x49xbf16>, vector<32x128xf32> -> vector<32x128xf32>
    %c0_3 = arith.constant 0 : index
    %c0_4 = arith.constant 0 : index
    %4 = vector.load %arg3[%c0_3, %c0_4] : memref<32x1xf32, #tpu.memory_space<vmem>>, vector<32x1xf32>
    %5 = vector.broadcast %4 : vector<32x1xf32> to vector<32x128xf32>
    %6 = arith.addf %3, %5 : vector<32x128xf32>
    %cst_5 = arith.constant 0.00999999977 : f32
    %7 = vector.broadcast %cst_5 : f32 to vector<32x128xf32>
    %8 = arith.mulf %7, %6 : vector<32x128xf32>
    %9 = arith.maximumf %6, %8 : vector<32x128xf32>
    %c0_6 = arith.constant 0 : index
    %c0_7 = arith.constant 0 : index
    %10 = vector.load %arg4[%c0_6, %c0_7] : memref<32x32xbf16, #tpu.memory_space<vmem>>, vector<32x32xbf16>
    %11 = arith.truncf %9 : vector<32x128xf32> to vector<32x128xbf16>
    %cst_8 = arith.constant dense<0.000000e+00> : vector<32x128xf32>
    %12 = tpu.matmul %10, %11, %cst_8 {dimension_numbers = #tpu.dot_dimension_numbers<[1], [0], [0], [1], [0, 0, 1, 1], [], []>} : vector<32x32xbf16>, vector<32x128xbf16>, vector<32x128xf32> -> vector<32x128xf32>
    %c0_9 = arith.constant 0 : index
    %c0_10 = arith.constant 0 : index
    %13 = vector.load %arg5[%c0_9, %c0_10] : memref<32x1xf32, #tpu.memory_space<vmem>>, vector<32x1xf32>
    %14 = vector.broadcast %13 : vector<32x1xf32> to vector<32x128xf32>
    %15 = arith.addf %12, %14 : vector<32x128xf32>
    %cst_11 = arith.constant 0.00999999977 : f32
    %16 = vector.broadcast %cst_11 : f32 to vector<32x128xf32>
    %17 = arith.mulf %16, %15 : vector<32x128xf32>
    %18 = arith.maximumf %15, %17 : vector<32x128xf32>
    %c0_12 = arith.constant 0 : index
    %c0_13 = arith.constant 0 : index
    %19 = vector.load %arg6[%c0_12, %c0_13] : memref<32x32xbf16, #tpu.memory_space<vmem>>, vector<32x32xbf16>
    %20 = arith.truncf %18 : vector<32x128xf32> to vector<32x128xbf16>
    %cst_14 = arith.constant dense<0.000000e+00> : vector<32x128xf32>
    %21 = tpu.matmul %19, %20, %cst_14 {dimension_numbers = #tpu.dot_dimension_numbers<[1], [0], [0], [1], [0, 0, 1, 1], [], []>} : vector<32x32xbf16>, vector<32x128xbf16>, vector<32x128xf32> -> vector<32x128xf32>
    %c0_15 = arith.constant 0 : index
    %c0_16 = arith.constant 0 : index
    %22 = vector.load %arg7[%c0_15, %c0_16] : memref<32x1xf32, #tpu.memory_space<vmem>>, vector<32x1xf32>
    %23 = vector.broadcast %22 : vector<32x1xf32> to vector<32x128xf32>
    %24 = arith.addf %21, %23 : vector<32x128xf32>
    %cst_17 = arith.constant 0.00999999977 : f32
    %25 = vector.broadcast %cst_17 : f32 to vector<32x128xf32>
    %26 = arith.mulf %25, %24 : vector<32x128xf32>
    %27 = arith.maximumf %24, %26 : vector<32x128xf32>
    %c0_18 = arith.constant 0 : index
    %c0_19 = arith.constant 0 : index
    %28 = vector.load %arg8[%c0_18, %c0_19] : memref<32x1xf32, #tpu.memory_space<vmem>>, vector<32x1xf32>
    %29 = vector.broadcast %28 : vector<32x1xf32> to vector<32x128xf32>
    %30 = arith.mulf %27, %29 : vector<32x128xf32>
    %cst_20 = arith.constant dense<0.000000e+00> : vector<128xf32>
    %31 = vector.multi_reduction <add>, %30, %cst_20 [0] : vector<32x128xf32> to vector<128xf32>
    %32 = vector.shape_cast %31 : vector<128xf32> to vector<1x128xf32>
    %c0_21 = arith.constant 0 : index
    %c0_22 = arith.constant 0 : index
    %33 = vector.load %arg9[%c0_21, %c0_22] : memref<1x1xf32, #tpu.memory_space<vmem>>, vector<1x1xf32>
    %34 = vector.broadcast %33 : vector<1x1xf32> to vector<1x128xf32>
    %35 = arith.addf %32, %34 : vector<1x128xf32>
    %cst_23 = arith.constant 0.000000e+00 : f32
    %36 = vector.broadcast %cst_23 : f32 to vector<1x128xf32>
    %37 = arith.subf %36, %35 : vector<1x128xf32>
    %38 = math.exp %37 : vector<1x128xf32>
    %cst_24 = arith.constant 1.000000e+00 : f32
    %39 = vector.broadcast %cst_24 : f32 to vector<1x128xf32>
    %40 = arith.addf %39, %38 : vector<1x128xf32>
    %cst_25 = arith.constant 1.000000e+00 : f32
    %41 = vector.broadcast %cst_25 : f32 to vector<1x128xf32>
    %42 = arith.divf %41, %40 : vector<1x128xf32>
    %c0_26 = arith.constant 0 : index
    %c0_27 = arith.constant 0 : index
    %43 = vector.load %arg10[%c0_26, %c0_27] : memref<1x128xf32, #tpu.memory_space<vmem>>, vector<1x128xf32>
    tpu.vector_store %arg10[%c0_26, %c0_27], %42 {strides = array<i32>} : memref<1x128xf32, #tpu.memory_space<vmem>>, vector<1x128xf32>,
    return
  }
  func.func @transform_0(%arg0: i32) -> (i32, i32) {
    %c0_i32 = arith.constant 0 : i32
    %c0_i32_0 = arith.constant 0 : i32
    return %arg0, %c0_i32 : i32, i32
  }
  func.func @transform_1(%arg0: i32) -> (i32, i32) {
    %c0_i32 = arith.constant 0 : i32
    %c0_i32_0 = arith.constant 0 : i32
    %c0_i32_1 = arith.constant 0 : i32
    return %c0_i32, %c0_i32_0 : i32, i32
  }
  func.func @transform_2(%arg0: i32) -> (i32, i32) {
    %c0_i32 = arith.constant 0 : i32
    %c0_i32_0 = arith.constant 0 : i32
    %c0_i32_1 = arith.constant 0 : i32
    return %c0_i32, %c0_i32_0 : i32, i32
  }
  func.func @transform_3(%arg0: i32) -> (i32, i32) {
    %c0_i32 = arith.constant 0 : i32
    %c0_i32_0 = arith.constant 0 : i32
    %c0_i32_1 = arith.constant 0 : i32
    return %c0_i32, %c0_i32_0 : i32, i32
  }
  func.func @transform_4(%arg0: i32) -> (i32, i32) {
    %c0_i32 = arith.constant 0 : i32
    %c0_i32_0 = arith.constant 0 : i32
    %c0_i32_1 = arith.constant 0 : i32
    return %c0_i32, %c0_i32_0 : i32, i32
  }
  func.func @transform_5(%arg0: i32) -> (i32, i32) {
    %c0_i32 = arith.constant 0 : i32
    %c0_i32_0 = arith.constant 0 : i32
    %c0_i32_1 = arith.constant 0 : i32
    return %c0_i32, %c0_i32_0 : i32, i32
  }
  func.func @transform_6(%arg0: i32) -> (i32, i32) {
    %c0_i32 = arith.constant 0 : i32
    %c0_i32_0 = arith.constant 0 : i32
    %c0_i32_1 = arith.constant 0 : i32
    return %c0_i32, %c0_i32_0 : i32, i32
  }
  func.func @transform_7(%arg0: i32) -> (i32, i32) {
    %c0_i32 = arith.constant 0 : i32
    %c0_i32_0 = arith.constant 0 : i32
    %c0_i32_1 = arith.constant 0 : i32
    return %c0_i32, %c0_i32_0 : i32, i32
  }
  func.func @transform_8(%arg0: i32) -> (i32, i32) {
    %c0_i32 = arith.constant 0 : i32
    %c0_i32_0 = arith.constant 0 : i32
    %c0_i32_1 = arith.constant 0 : i32
    return %c0_i32, %c0_i32_0 : i32, i32
  }
  func.func @transform_9(%arg0: i32) -> (i32, i32) {
    %c0_i32 = arith.constant 0 : i32
    %c0_i32_0 = arith.constant 0 : i32
    return %c0_i32, %arg0 : i32, i32
  }
}

</mosaic_0001>

<bundles_post_ra>
// kernel: tpu_custom_call.1
= control target key start
LH: loop header
LB: loop body
LE: loop exit
PB: predicated region body
PF: predicated region fallthrough
CT: control target
= control target key end

     0   :  { %s766_s0 = inlined_call_operand.vmem [shape: f32[2,49], index: 0, kind: input, shape index: {}]   ;;  %s767_s1 = inlined_call_operand.vmem [shape: bf16[32,49], index: 1, kind: input, shape index: {}]   ;;  %s768_s2 = inlined_call_operand.vmem [shape: f32[32,1], index: 2, kind: input, shape index: {}]   ;;  %s769_s3 = inlined_call_operand.vmem [shape: bf16[32,32], index: 3, kind: input, shape index: {}]   ;;  %s770_s4 = inlined_call_operand.vmem [shape: f32[32,1], index: 4, kind: input, shape index: {}]   ;;  %s771_s5 = inlined_call_operand.vmem [shape: bf16[32,32], index: 5, kind: input, shape index: {}]   ;;  %s772_s6 = inlined_call_operand.vmem [shape: f32[32,1], index: 6, kind: input, shape index: {}]   ;;  %s773_s7 = inlined_call_operand.vmem [shape: f32[32,1], index: 7, kind: input, shape index: {}]   ;;  %s774_s8 = inlined_call_operand.<no memory space> [shape: f32[1,1], index: 8, kind: input, shape index: {}]   ;;  %s775_s9 = inlined_call_operand.hbm [shape: f32[1,2], index: 9, kind: output, shape index: {}]  }
   0x1   :  { %v14_v0 = vstv %s774_s8 }
   0x2   :  { %15 = vst [vmem:[#allocation2] sm:$0x1] %v14_v0 }
   0x3   :  { %v50_v1 = vld [vmem:[%s766_s0 + $0x70] sm:$0xff]  ;;  %v51_v2 = vld [vmem:[%s766_s0 + $0x78] sm:$0xff]  ;;  %vm98_vm0 = vcmask 400384   ;;  %v48_v3 = vld [vmem:[%s766_s0 + $0x60] sm:$0xff]  ;;  %v572_v6 = vmov 0  }
   0x4   :  { %v59_v4 = vpack.c.bf16 %v51_v2, %v50_v1  ;;  %v49_v5 = vld [vmem:[%s766_s0 + $0x68] sm:$0xff]  ;;  %538 = vset.pattern.permute.xlu0 %v572_v6  ;;  %539 = vset.pattern.permute.xlu1 %v572_v6  ;;  %v46_v9 = vld [vmem:[%s766_s0 + $0x50] sm:$0xff]  ;;  %v47_v10 = vld [vmem:[%s766_s0 + $0x58] sm:$0xff] }
   0x5   :  { %v58_v7 = vpack.c.bf16 %v49_v5, %v48_v3  ;;  %v540_v11 = vld [vmem:[%s767_s1] sm:$0xff]   ;;  %v66_v12 = vld [vmem:[%s768_s2 + $0x10] sm:$0xff]  ;;  %v57_v15 = vpack.c.bf16 %v47_v10, %v46_v9  ;;  %v67_v16 = vld [vmem:[%s768_s2 + $0x18] sm:$0xff] }
   0x6   :  { %528 = vmatprep.subr.msk.bf16.mxu0 %vm98_vm0, %v59_v4  ;;  %v127_v8 = vsel %vm98_vm0, %v59_v4, 0  ;;  %508 = vmatprep.mubr.msk.bf16.mxu0 %vm98_vm0, %v540_v11  ;;  %v64_v13 = vld [vmem:[%s768_s2] sm:$0xff]  ;;  %v65_v17 = vld [vmem:[%s768_s2 + $0x8] sm:$0xff]  ;;  %v194_v20 = vld [vmem:[%s770_s4 + $0x10] sm:$0xff] }
   0x7   :  { %493 = vmatpush3.bf16.xpose.msra.mxu0 %v127_v8  ;;  %80 = vperm.xlu0 %538, %v66_v12   ;;  %v124_v14 = vsel %vm98_vm0, %v58_v7, 0  ;;  %v44_v18 = vld [vmem:[%s766_s0 + $0x40] sm:$0xff]  ;;  %v45_v19 = vld [vmem:[%s766_s0 + $0x48] sm:$0xff]  ;;  %v195_v21 = vld [vmem:[%s770_s4 + $0x18] sm:$0xff] }
   0x8   :  { %529 = vmatprep.subr.msk.bf16.mxu0 %vm98_vm0, %v58_v7  ;;  %70 = vperm.xlu1 %539, %v64_v13  }
   0xb   :  { %85 = vperm.xlu0 %538, %v67_v16  }
   0xc   :  { %75 = vperm.xlu1 %539, %v65_v17  }
   0xf   :  { %495 = vmatpush3.bf16.xpose.msra.mxu0 %v124_v14 }
  0x10   :  { %530 = vmatprep.subr.msk.bf16.mxu0 %vm98_vm0, %v57_v15 }
  0x11   :  { %16 = vsyncpa [#allocation4], 0  ;;  %208 = vperm.xlu0 %538, %v194_v20   ;;  %v121_v22 = vsel %vm98_vm0, %v57_v15, 0  ;;  %v56_v23 = vpack.c.bf16 %v45_v19, %v44_v18  ;;  %v192_v24 = vld [vmem:[%s770_s4] sm:$0xff]  ;;  %213 = vperm.xlu1 %539, %v195_v21   ;;  %v193_v25 = vld [vmem:[%s770_s4 + $0x8] sm:$0xff]  ;;  %vm226_vm1 = vcmask 261120  }
  0x12   :  { %v296_v26 = vld [vmem:[%s772_s6] sm:$0xff]  ;;  %v42_v27 = vld [vmem:[%s766_s0 + $0x30] sm:$0xff]  ;;  %v43_v28 = vld [vmem:[%s766_s0 + $0x38] sm:$0xff] }
  0x13   :  { %v297_v29 = vld [vmem:[%s772_s6 + $0x8] sm:$0xff]  ;;  %v118_v30 = vsel %vm98_vm0, %v56_v23, 0  ;;  %v55_v31 = vpack.c.bf16 %v43_v28, %v42_v27  ;;  %v298_v32 = vld [vmem:[%s772_s6 + $0x10] sm:$0xff]  ;;  %v299_v33 = vld [vmem:[%s772_s6 + $0x18] sm:$0xff] }
  0x14   :  { %v393_v34 = vld [vmem:[%s773_s7] sm:$0xff]  ;;  %v41_v36 = vld [vmem:[%s766_s0 + $0x28] sm:$0xff]  ;;  %v395_v40 = vld [vmem:[%s773_s7 + $0x10] sm:$0xff] }
  0x15   :  { %198 = vperm.xlu0 %538, %v192_v24   ;;  %203 = vperm.xlu1 %539, %v193_v25   ;;  %v40_v35 = vld [vmem:[%s766_s0 + $0x20] sm:$0xff]  ;;  %v394_v37 = vld [vmem:[%s773_s7 + $0x8] sm:$0xff]  ;;  %v115_v38 = vsel %vm98_vm0, %v55_v31, 0  ;;  %v396_v41 = vld [vmem:[%s773_s7 + $0x18] sm:$0xff] }
  0x16   :  { %v54_v39 = vpack.c.bf16 %v41_v36, %v40_v35  ;;  %v430_v42 = vld [vmem:[#allocation2] sm:$0x1]  ;;  %v38_v43 = vld [vmem:[%s766_s0 + $0x10] sm:$0xff]  ;;  %v39_v44 = vld [vmem:[%s766_s0 + $0x18] sm:$0xff] }
  0x17   :  { %497 = vmatpush3.bf16.xpose.msra.mxu0 %v121_v22  ;;  %v53_v46 = vpack.c.bf16 %v39_v44, %v38_v43  ;;  %v36_v47 = vld [vmem:[%s766_s0] sm:$0xff]  ;;  %v37_v48 = vld [vmem:[%s766_s0 + $0x8] sm:$0xff] }
  0x18   :  { %531 = vmatprep.subr.msk.bf16.mxu0 %vm98_vm0, %v56_v23  ;;  %v112_v45 = vsel %vm98_vm0, %v54_v39, 0  ;;  %v52_v50 = vpack.c.bf16 %v37_v48, %v36_v47  ;;  %v541_v52 = vld [vmem:[%s767_s1 + $0x8] sm:$0xff]   ;;  %v542_v53 = vld [vmem:[%s769_s3] sm:$0xff]  }
  0x19   :  { %302 = vperm.xlu0 %538, %v296_v26   ;;  %307 = vperm.xlu1 %539, %v297_v29   ;;  %v109_v49 = vsel %vm98_vm0, %v53_v46, 0  ;;  %v543_v12 = vld [vmem:[%s769_s3 + $0x8] sm:$0xff]   ;;  %v544_v13 = vld [vmem:[%s771_s5] sm:$0xff]  }
  0x1a   :  { %v106_v51 = vsel %vm98_vm0, %v52_v50, 0  ;;  %516 = vmatprep.mubr.msk.bf16.mxu1 %vm226_vm1, %v542_v53  ;;  %v545_v36 = vld [vmem:[%s771_s5 + $0x8] sm:$0xff]   ;;  %s573_s5 = smov [#allocation3]  }
  0x1b   :  { %s454_s12 = sshll.u32 %s573_s5, 4  ;;  %s455_s12 = int_to_ptr.vmem [resolvable:$true] %s454_s12 }
  0x1c   :  { %s550_s13 = scalar_lea.vmem %s455_s12, 16  ;;  %s554_s14 = scalar_lea.vmem %s455_s12, 32 }
  0x1d   :  { %312 = vperm.xlu0 %538, %v298_v32   ;;  %317 = vperm.xlu1 %539, %v299_v33   ;;  %p551_p0 = scmp.ne.s32.totalorder %s455_s12, %s550_s13  ;;  %p555_p1 = scmp.lt.s32.totalorder %s455_s12, %s455_s12 }
  0x1e   :  { %p556_p2 = scmp.lt.s32.totalorder %s554_s14, %s550_s13 }
  0x1f   :  { %499 = vmatpush3.bf16.xpose.msra.mxu0 %v118_v30 }
  0x20   :  { %532 = vmatprep.subr.msk.bf16.mxu0 %vm98_vm0, %v55_v31  ;;  %p557_p3 = por %p556_p2, %p555_p1 }
  0x21   :  { %399 = vperm.xlu0 %538, %v393_v34   ;;  %404 = vperm.xlu1 %539, %v394_v37  }
  0x22   :  { %p558_p4 = pnand %p557_p3, %p551_p0 }
  0x25   :  { %409 = vperm.xlu0 %538, %v395_v40   ;;  %414 = vperm.xlu1 %539, %v396_v41  }
  0x27   :  { %501 = vmatpush3.bf16.xpose.msra.mxu0 %v115_v38 }
  0x28   :  { %533 = vmatprep.subr.msk.bf16.mxu0 %vm98_vm0, %v54_v39 }
  0x29   :  { %433 = vperm.xlu0 %538, %v430_v42  }
  0x2f   :  { %503 = vmatpush3.bf16.xpose.msra.mxu0 %v112_v45 }
  0x30   :  { %534 = vmatprep.subr.msk.bf16.mxu0 %vm98_vm0, %v53_v46 }
  0x37   :  { %505 = vmatpush3.bf16.xpose.msra.mxu0 %v109_v49 }
  0x38   :  { %535 = vmatprep.subr.msk.bf16.mxu0 %vm98_vm0, %v52_v50 }
  0x3f   :  { %507 = vmatpush3.bf16.xpose.msra.mxu0 %v106_v51 }
  0x46   :  { %509 = vmatmul.mubr.msk.bf16.vlgmr.msra.gmra.mxu0 %vm98_vm0, %v541_v52 }
  0x82   :  { %v81_v54 = vpop.permute.xlu0 %80 }
  0x83   :  { %v71_v55 = vpop.permute.xlu1 %70 }
  0x86   :  { %v86_v60 = vpop.permute.xlu0 %85 }
  0x87   :  { %v76_v0 = vpop.permute.xlu1 %75 }
  0x8c   :  { %v209_v14 = vpop.permute.xlu0 %208  ;;  %v214_v15 = vpop.permute.xlu1 %213 }
  0x90   :  { %v199_v18 = vpop.permute.xlu0 %198  ;;  %v204_v24 = vpop.permute.xlu1 %203 }
  0x94   :  { %v303_v37 = vpop.permute.xlu0 %302  ;;  %v308_v38 = vpop.permute.xlu1 %307 }
  0x98   :  { %v313_v40 = vpop.permute.xlu0 %312  ;;  %v318_v44 = vpop.permute.xlu1 %317 }
  0x9c   :  { %v400_v51 = vpop.permute.xlu0 %399 }
 0x106   :  { %v510_v56 = vpop.f32.mrf.mxu0 }
 0x107   :  { %v172_v57 = vadd.f32 %v510_v56, %v81_v54 }
 0x108   :  { %v163_v58 = vpop.f32.mrf.mxu0 }
 0x109   :  { %v164_v59 = vadd.f32 %v163_v58, %v71_v55  ;;  %v180_v62 = vmul.f32 0.01, %v172_v57  ;;  %v405_v55 = vpop.permute.xlu1 %404 }
 0x10a   :  { %v511_v61 = vpop.f32.mrf.mxu0 }
 0x10b   :  { %v175_v63 = vadd.f32 %v511_v61, %v86_v60  ;;  %v178_v2 = vmul.f32 0.01, %v164_v59  ;;  %v184_v5 = vmax.f32 %v172_v57, %v180_v62  ;;  %v410_v61 = vpop.permute.xlu0 %409 }
 0x10c   :  { %v166_v1 = vpop.f32.mrf.mxu0 }
 0x10d   :  { %v181_v3 = vmul.f32 0.01, %v175_v63  ;;  %v167_v4 = vadd.f32 %v166_v1, %v76_v0  ;;  %v182_v8 = vmax.f32 %v164_v59, %v178_v2  ;;  %v415_v0 = vpop.permute.xlu1 %414 }
 0x10f   :  { %v185_v6 = vmax.f32 %v175_v63, %v181_v3  ;;  %v179_v7 = vmul.f32 0.01, %v167_v4  ;;  %v436_v3 = vlaneseq }
 0x111   :  { %v183_v9 = vmax.f32 %v167_v4, %v179_v7  ;;  %v191_v10 = vpack.c.bf16 %v185_v6, %v184_v5  ;;  %v437_v6 = vshrl.u32 %v436_v3, 7 }
 0x113   :  { %512 = vmatprep.subr.bf16.mxu1 %v191_v10  ;;  %v190_v11 = vpack.c.bf16 %v183_v9, %v182_v8  ;;  %v438_v9 = vsub.s32 0, %v437_v6 }
 0x114   :  { %513 = vmatpush3.bf16.msra.mxu1 %v191_v10 }
 0x115   :  { %514 = vmatprep.subr.bf16.mxu1 %v190_v11 }
 0x118   :  { %515 = vmatpush3.bf16.msra.mxu1 %v190_v11  ;;  %v434_v11 = vpop.permute.xlu0 %433 }
 0x11b   :  { %517 = vmatmul.mubr.msk.bf16.vlgmr.msra.gmra.mxu1 %vm226_vm1, %v543_v12 }
 0x11c   :  { %524 = vmatprep.mubr.msk.bf16.mxu1 %vm226_vm1, %v544_v13  ;;  %v439_v13 = vrot.slane %v434_v11, %v438_v9 }
 0x1db   :  { %v518_v16 = vpop.f32.mrf.mxu1 }
 0x1dc   :  { %v276_v17 = vadd.f32 %v518_v16, %v209_v14 }
 0x1dd   :  { %v267_v19 = vpop.f32.mrf.mxu1 }
 0x1de   :  { %v268_v20 = vadd.f32 %v267_v19, %v199_v18  ;;  %v284_v22 = vmul.f32 0.01, %v276_v17 }
 0x1df   :  { %v519_v21 = vpop.f32.mrf.mxu1 }
 0x1e0   :  { %v279_v23 = vadd.f32 %v519_v21, %v214_v15  ;;  %v282_v26 = vmul.f32 0.01, %v268_v20  ;;  %v288_v29 = vmax.f32 %v276_v17, %v284_v22 }
 0x1e1   :  { %v270_v25 = vpop.f32.mrf.mxu1 }
 0x1e2   :  { %v285_v27 = vmul.f32 0.01, %v279_v23  ;;  %v271_v28 = vadd.f32 %v270_v25, %v204_v24  ;;  %v286_v32 = vmax.f32 %v268_v20, %v282_v26 }
 0x1e4   :  { %v289_v30 = vmax.f32 %v279_v23, %v285_v27  ;;  %v283_v31 = vmul.f32 0.01, %v271_v28 }
 0x1e6   :  { %v287_v33 = vmax.f32 %v271_v28, %v283_v31  ;;  %v295_v34 = vpack.c.bf16 %v289_v30, %v288_v29 }
 0x1e8   :  { %520 = vmatprep.subr.bf16.mxu1 %v295_v34  ;;  %v294_v35 = vpack.c.bf16 %v287_v33, %v286_v32 }
 0x1e9   :  { %521 = vmatpush3.bf16.msra.mxu1 %v295_v34 }
 0x1ea   :  { %522 = vmatprep.subr.bf16.mxu1 %v294_v35 }
 0x1ed   :  { %523 = vmatpush3.bf16.msra.mxu1 %v294_v35 }
 0x1f0   :  { %525 = vmatmul.mubr.msk.bf16.vlgmr.msra.gmra.mxu1 %vm226_vm1, %v545_v36 }
 0x2b0   :  { %v526_v39 = vpop.f32.mrf.mxu1 }
 0x2b1   :  { %v379_v42 = vadd.f32 %v526_v39, %v313_v40 }
 0x2b2   :  { %v370_v41 = vpop.f32.mrf.mxu1 }
 0x2b3   :  { %v371_v43 = vadd.f32 %v370_v41, %v303_v37  ;;  %v387_v49 = vmul.f32 0.01, %v379_v42 }
 0x2b4   :  { %v527_v45 = vpop.f32.mrf.mxu1 }
 0x2b5   :  { %v385_v46 = vmul.f32 0.01, %v371_v43  ;;  %v382_v47 = vadd.f32 %v527_v45, %v318_v44  ;;  %v391_v56 = vmax.f32 %v379_v42, %v387_v49 }
 0x2b6   :  { %v373_v48 = vpop.f32.mrf.mxu1 }
 0x2b7   :  { %v374_v50 = vadd.f32 %v373_v48, %v308_v38  ;;  %v389_v52 = vmax.f32 %v371_v43, %v385_v46  ;;  %v388_v53 = vmul.f32 0.01, %v382_v47  ;;  %v419_v62 = vmul.f32 %v410_v61, %v391_v56 }
 0x2b9   :  { %v386_v54 = vmul.f32 0.01, %v374_v50  ;;  %v417_v58 = vmul.f32 %v400_v51, %v389_v52  ;;  %v392_v59 = vmax.f32 %v382_v47, %v388_v53 }
 0x2bb   :  { %v390_v57 = vmax.f32 %v374_v50, %v386_v54  ;;  %v420_v1 = vmul.f32 %v415_v0, %v392_v59 }
 0x2bd   :  { %v418_v60 = vmul.f32 %v405_v55, %v390_v57 }
 0x2bf   :  { %v421_v63 = vadd.f32 %v418_v60, %v417_v58 }
 0x2c1   :  { %v422_v2 = vadd.f32 %v421_v63, %v419_v62 }
 0x2c3   :  { %v423_v4 = vadd.f32 %v422_v2, %v420_v1 }
 0x2c5   :  { %v424_v5 = vrot.slane %v423_v4, 4 }
 0x2c7   :  { %v425_v7 = vadd.f32 %v424_v5, %v423_v4 }
 0x2c9   :  { %v426_v8 = vrot.slane %v425_v7, 2 }
 0x2cb   :  { %v427_v10 = vadd.f32 %v426_v8, %v425_v7 }
 0x2cd   :  { %v428_v12 = vrot.slane %v427_v10, 1 }
 0x2cf   :  { %v429_v14 = vadd.f32 %v428_v12, %v427_v10 }
 0x2d1   :  { %v440_v15 = vadd.f32 %v439_v13, %v429_v14 }
 0x2d3   :  { %v441_v16 = vsub.f32 0.0, %v440_v15 }
 0x2d5   :  { %v442_v17 = vmul.f32 1.442695, %v441_v16 }
 0x2d7   :  { %546 = vpow2.f32 %v442_v17 }
 0x2e4   :  { %v547_v18 = vpop.eup %546 }
 0x2e5   :  { %v444_v19 = vadd.f32 1.0, %v547_v18 }
 0x2e7   :  { %548 = vrcp.f32 %v444_v19 }
 0x2f4   :  { %v549_v20 = vpop.eup %548 }
 0x2f5   :  { %447 = vst [vmem:[#allocation3] sm:$0x1] %v549_v20 }
 0x2f6   :  { %561 = shalt.err (!%p558_p4)
}
 0x2f7   :  { %457 = dma.vmem_to_hbm [thread:$0]  %s455_s12, 16, %s775_s9, [#allocation4]  }
 0x2f8   :  { %570 = dma.done.wait [#allocation4], 16  }
 0x2f9   :  { %571 = vsyncadd [#allocation4], 4294967280 }
 0x2fa   :  { %461 = vsyncpa [#allocation4], 1 }

</bundles_post_ra>
